<compile_context>
chip_gen: v5e
topology: v5e:2x2
jax: 0.10.0
libtpu: 0.0.40
codegen_flags: <defaults>
</compile_context>

<pallas_src>
import functools

import jax
import jax.numpy as jnp
from jax.experimental import pallas as pl
from jax.experimental.pallas import tpu as pltpu

BN_EPS = 1e-5
_LANE = 128
_SUBLANE = 8


def _round_up(x, m):
    return (x + m - 1) // m * m


def _cdiv(a, b):
    return -(-a // b)


def _tree_sum(vals):
    """Pairwise (tree) sum of a static list of equal-shaped arrays."""
    while len(vals) > 1:
        nxt = [vals[i] + vals[i + 1] for i in range(0, len(vals) - 1, 2)]
        if len(vals) % 2:
            nxt.append(vals[-1])
        vals = nxt
    return vals[0]


def _slimmable_block_kernel(x_ref, wt_ref, gamma_ref, beta_ref, o_ref,
                            sum_ref, sumsq_ref, scale_ref, shift_ref,
                            *y_scratch, n_rows, tile_n, keep_y):
    """Fused Linear + BatchNorm1d(training) over grid = (feat tile, phase, batch tile).

    phase 0: matmul + accumulate per-feature sum / sum-of-squares into resident
             (8, tile_f) VMEM scratch (zeroed at the first batch tile).
    phase 1: normalize (y * scale + shift) with the batch-global BN stats and
             write each output block exactly once.  y is either kept resident in
             VMEM scratch (keep_y) or recomputed with the resident weight.
    """
    p = pl.program_id(1)          # phase: 0 = stats, 1 = normalize + store
    t = pl.program_id(2)          # batch tile

    def compute_y():
        x = x_ref[...]
        if x.dtype != jnp.bfloat16:          # static fallback; wrapper feeds bf16
            x = x.astype(jnp.bfloat16)
        return jnp.dot(x, wt_ref[...], preferred_element_type=jnp.float32)

    def accumulate(y):
        @pl.when(t == 0)
        def _init():
            sum_ref[...] = jnp.zeros_like(sum_ref)
            sumsq_ref[...] = jnp.zeros_like(sumsq_ref)

        def add(ym):
            # Sublane-block (8-row) partial sums; the cross-sublane XLU reduce is
            # deferred to the finalize step (once per feature tile, not per tile).
            blocks = [ym[r:r + _SUBLANE] for r in range(0, tile_n, _SUBLANE)]
            sum_ref[...] += _tree_sum(blocks)
            sumsq_ref[...] += _tree_sum([b * b for b in blocks])

        if n_rows % tile_n == 0:
            add(y)                            # no ragged rows: no masking anywhere
        else:
            last = pl.num_programs(2) - 1

            @pl.when(t != last)
            def _full_tile():
                add(y)

            @pl.when(t == last)
            def _ragged_tile():
                row = t * tile_n + jax.lax.broadcasted_iota(
                    jnp.int32, (tile_n, 1), 0)
                add(jnp.where(row < n_rows, y, 0.0))

    def finalize():
        inv_n = 1.0 / n_rows
        s = jnp.sum(sum_ref[...], axis=0, keepdims=True)      # one XLU reduce
        ss = jnp.sum(sumsq_ref[...], axis=0, keepdims=True)
        mean = s * inv_n
        # TODO(synk): E[y^2]-E[y]^2 can cancel when |mean| >> std; switch to a
        # shifted / two-pass variance if widths or activation offsets grow.
        var = jnp.maximum(ss * inv_n - mean * mean, 0.0)
        inv_std = jax.lax.rsqrt(var + BN_EPS)                  # EUP slot
        scale = gamma_ref[...] * inv_std
        scale_ref[...] = scale
        shift_ref[...] = beta_ref[...] - mean * scale

    def normalize(y):
        # activation = Identity; dropout evaluated in eval mode -> no-op.
        # TODO(synk): training-mode dropout (p=0.1) omitted (eval-mode no-op).
        o_ref[...] = (y * scale_ref[...] + shift_ref[...]).astype(o_ref.dtype)

    if keep_y:
        (y_vmem,) = y_scratch

        @pl.when(p == 0)
        def _phase0():
            y = compute_y()
            y_vmem[t] = y                     # keep y resident; no phase-1 recompute
            accumulate(y)

        @pl.when(jnp.logical_and(p == 1, t == 0))
        def _stats():
            finalize()

        @pl.when(p == 1)
        def _phase1():
            normalize(y_vmem[t])
    else:
        y = compute_y()                       # recompute path: matmul in both phases

        @pl.when(p == 0)
        def _phase0():
            accumulate(y)

        @pl.when(jnp.logical_and(p == 1, t == 0))
        def _stats():
            finalize()

        @pl.when(p == 1)
        def _phase1():
            normalize(y)


def _estimate_vmem_bytes(*, tile_n, in_max, tile_f, out_itemsize, num_tiles, keep_y):
    w = 2 * in_max * tile_f * 2                 # bf16 weight (assume double-buffered)
    xb = 2 * tile_n * in_max * 2                # bf16 x tile, double-buffered
    ob = 2 * tile_n * tile_f * out_itemsize     # output tile, double-buffered
    gb = 2 * 2 * tile_f * 4 * 2                 # gamma + beta
    scr = (8 + 8 + 1 + 1) * tile_f * 4          # stats / scale / shift scratch
    y = num_tiles * tile_n * tile_f * 4 if keep_y else 0
    return w + xb + ob + gb + scr + y


def prepare_slimmable_block(params, idx):
    """Parameter-sized glue for one width index, computed ONCE and cached.

    Builds the zero-masked, 128-lane-padded, pre-transposed bf16 effective weight
    and padded gamma/beta so the kernel consumes the FULL x (no activation-sized
    slice/transpose at call time) and emits a lane-dense output.
    Call this OUTSIDE jit (it caches concrete arrays in `params`).
    """
    cache = params.setdefault("_prepared", {})
    if idx in cache:
        return cache[idx]

    in_f = params["in_features_list"][idx]
    out_f = params["out_features_list"][idx]
    wt = params["weight_t"]                                    # (in_max, out_max)
    in_max = wt.shape[0]
    out_pad = _round_up(out_f, _LANE)

    wt_eff = jnp.zeros((in_max, out_pad), jnp.float32)
    wt_eff = wt_eff.at[:in_f, :out_f].set(wt[:in_f, :out_f]).astype(jnp.bfloat16)
    gamma = jnp.zeros((1, out_pad), jnp.float32).at[0, :out_f].set(
        params["bn_gamma"][idx][:out_f])
    beta = jnp.zeros((1, out_pad), jnp.float32).at[0, :out_f].set(
        params["bn_beta"][idx][:out_f])
    # NOTE: the linear bias is intentionally NOT applied; a constant per-feature
    # shift is exactly cancelled by the training-mode BatchNorm that follows.
    # TODO(synk): BatchNorm running-stats update (training side effect) omitted.

    prepared = dict(wt_eff=wt_eff, gamma=gamma, beta=beta,
                    in_max=in_max, out_f=out_f, out_pad=out_pad)
    cache[idx] = prepared
    return prepared


def slimmable_block_forward(x, prepared, *, tile_n=512, tile_f=None, keep_y=None,
                            slice_output=True, out_dtype=None,
                            vmem_limit_bytes=None):
    """Forward pass of SlimmableBlock for one (static) width.

    x: (N, in_max).  Returns (N, out_f) (or (N, out_pad) with slice_output=False).

    Performance notes:
      * v7x: feature tiles run on a "parallel" grid axis (both TensorCores);
        the VMEM budget is computed explicitly and capped at 64 MiB.
      * v6e/v5e: larger tile_n pays off; vmem_limit_bytes is automatically raised
        above the 32/16 MiB scoped defaults.  On v5e consider out_dtype=bf16 to
        halve the output stream.
      * Pass bf16 x from upstream to make the one-time bf16 cast here free.
    """
    in_max = prepared["in_max"]
    out_pad = prepared["out_pad"]
    out_f = prepared["out_f"]
    n = x.shape[0]
    assert x.shape == (n, in_max), "x must be (N, max(in_features_list))"
    if out_dtype is None:
        out_dtype = x.dtype

    # bf16 x once in the wrapper: halves the in-kernel x HBM stream (x is read
    # twice in the recompute path) and removes the per-tile/per-phase VPU cast.
    if x.dtype != jnp.bfloat16:
        x = x.astype(jnp.bfloat16)

    tile_n = max(_SUBLANE, min(_round_up(tile_n, _SUBLANE), _round_up(n, _SUBLANE)))
    num_tiles = _cdiv(n, tile_n)

    if tile_f is None:
        tile_f = min(out_pad, 512)
    tile_f = min(_round_up(tile_f, _LANE), out_pad)
    while out_pad % tile_f:                    # 128 always divides out_pad
        tile_f -= _LANE
    num_f = out_pad // tile_f

    out_itemsize = jnp.dtype(out_dtype).itemsize
    est_keep = _estimate_vmem_bytes(tile_n=tile_n, in_max=in_max, tile_f=tile_f,
                                    out_itemsize=out_itemsize,
                                    num_tiles=num_tiles, keep_y=True)
    if keep_y is None:
        keep_y = est_keep <= (20 << 20)        # conservative budget on all gens
    est = est_keep if keep_y else _estimate_vmem_bytes(
        tile_n=tile_n, in_max=in_max, tile_f=tile_f,
        out_itemsize=out_itemsize, num_tiles=num_tiles, keep_y=False)
    if vmem_limit_bytes is None:
        # above the v5e/v6e scoped defaults, within v7x's 64 MiB physical VMEM
        vmem_limit_bytes = min(max(32 << 20, int(est * 1.5) + (4 << 20)), 64 << 20)

    if keep_y:
        x_map = lambda f, p, t: (t * (1 - p), 0)   # phase 1: park x (unused)
    else:
        x_map = lambda f, p, t: (t, 0)

    kernel = functools.partial(_slimmable_block_kernel,
                               n_rows=n, tile_n=tile_n, keep_y=keep_y)

    scratch = [
        pltpu.VMEM((8, tile_f), jnp.float32),    # per-sublane partial sums
        pltpu.VMEM((8, tile_f), jnp.float32),    # per-sublane partial sums of sq.
        pltpu.VMEM((1, tile_f), jnp.float32),    # scale = gamma * rsqrt(var + eps)
        pltpu.VMEM((1, tile_f), jnp.float32),    # shift = beta - mean * scale
    ]
    if keep_y:
        scratch.append(pltpu.VMEM((num_tiles, tile_n, tile_f), jnp.float32))

    # TODO(synk): single-buffer the resident weight/gamma/beta specs
    # (pipeline_mode=pl.Buffered(1)) to halve their VMEM footprint on v7x once
    # universally supported; their index maps are constant along (p, t).
    out = pl.pallas_call(
        kernel,
        out_shape=jax.ShapeDtypeStruct((n, out_pad), out_dtype),
        grid_spec=pltpu.PrefetchScalarGridSpec(
            num_scalar_prefetch=0,
            grid=(num_f, 2, num_tiles),          # (feature tile, phase, batch tile)
            in_specs=[
                pl.BlockSpec((tile_n, in_max), x_map),                   # x (bf16)
                pl.BlockSpec((in_max, tile_f), lambda f, p, t: (0, f)),  # weight
                pl.BlockSpec((1, tile_f), lambda f, p, t: (0, f)),       # gamma
                pl.BlockSpec((1, tile_f), lambda f, p, t: (0, f)),       # beta
            ],
            # Phase 0 parks on output block (0, f) and never writes it; phase 1
            # writes block (t, f).  NOTE: relies on Pallas flushing an output
            # block only when its block index changes (current revisit
            # semantics); each HBM output block is written exactly once.
            out_specs=pl.BlockSpec((tile_n, tile_f), lambda f, p, t: (t * p, f)),
            scratch_shapes=scratch,
        ),
        compiler_params=pltpu.CompilerParams(
            # Feature tiles are independent (per-feature BN stats) -> "parallel"
            # (splits across v7x's 2 TensorCores).  Phase/batch axes carry the
            # stats accumulator in per-core VMEM scratch -> "arbitrary".
            dimension_semantics=("parallel", "arbitrary", "arbitrary"),
            vmem_limit_bytes=vmem_limit_bytes,
        ),
    )(x, prepared["wt_eff"], prepared["gamma"], prepared["beta"])

    if slice_output and out_f != out_pad:
        # TODO(synk): fold this slice into the consumer when it can take the
        # 128-lane-padded output (saves one activation-sized HBM pass).
        out = out[:, :out_f]
    return out


def init_params(key, in_features_list, out_features_list):
    in_max, out_max = max(in_features_list), max(out_features_list)
    kw, kb = jax.random.split(key)
    # deterministic nn.Linear-style init: U(-1/sqrt(in_max), 1/sqrt(in_max))
    bound = 1.0 / (in_max ** 0.5)
    weight = jax.random.uniform(kw, (out_max, in_max), jnp.float32, -bound, bound)
    bias = jax.random.uniform(kb, (out_max,), jnp.float32, -bound, bound)
    return {
        # stored pre-transposed so the forward pass never transposes at call time
        "weight_t": jnp.transpose(weight),            # (in_max, out_max)
        "bias": bias,                                 # kept for the reference check
        "bn_gamma": [jnp.ones((f,), jnp.float32) for f in out_features_list],
        "bn_beta": [jnp.zeros((f,), jnp.float32) for f in out_features_list],
        "in_features_list": in_features_list,
        "out_features_list": out_features_list,
    }


def _reference_f32(x, params, idx):
    """Exact module semantics in f32: Linear (with bias) -> BN(train) -> Identity."""
    in_f = params["in_features_list"][idx]
    out_f = params["out_features_list"][idx]
    w_t = params["weight_t"][:in_f, :out_f]
    y = x[:, :in_f] @ w_t + params["bias"][:out_f]
    mean = jnp.mean(y, axis=0, keepdims=True)
    var = jnp.mean((y - mean) ** 2, axis=0, keepdims=True)
    y = (y - mean) / jnp.sqrt(var + BN_EPS)
    return y * params["bn_gamma"][idx] + params["bn_beta"][idx]


def _reference_kernel_math(x, params, idx):
    """Pure-JAX replica of the kernel math (bf16 matmul inputs, no bias, f32 BN)."""
    in_f = params["in_features_list"][idx]
    out_f = params["out_features_list"][idx]
    w_t = params["weight_t"][:in_f, :out_f].astype(jnp.bfloat16)
    y = jnp.dot(x[:, :in_f].astype(jnp.bfloat16), w_t,
                preferred_element_type=jnp.float32)
    mean = jnp.mean(y, axis=0, keepdims=True)
    var = jnp.maximum(jnp.mean(y * y, axis=0, keepdims=True) - mean * mean, 0.0)
    y = (y - mean) * jax.lax.rsqrt(var + BN_EPS)
    return y * params["bn_gamma"][idx] + params["bn_beta"][idx]


if __name__ == "__main__":
    key = jax.random.PRNGKey(0)
    in_features_list = [16, 32]
    out_features_list = [24, 32]
    N = 256
    idx = 0

    kx, kp = jax.random.split(key)
    params = init_params(kp, in_features_list, out_features_list)
    x = jax.random.normal(kx, (N, max(in_features_list)), jnp.float32)

    # parameter-sized padding / bf16 cast done ONCE (cached per width), outside jit
    prepared = prepare_slimmable_block(params, idx)

    fwd = jax.jit(functools.partial(
        slimmable_block_forward, prepared=prepared, tile_n=128))
    out = fwd(x)
    jax.block_until_ready(out)
    assert out.shape == (N, out_features_list[idx])

    # tight check vs. a pure-JAX replica of the kernel math (bf16 MXU inputs)
    ref_k = _reference_kernel_math(x, params, idx)
    assert jnp.allclose(out, ref_k, atol=2e-3, rtol=2e-3), \
        "mismatch vs kernel-math reference (resident-y path)"

    # loose check vs. exact f32 module semantics (bf16 matmul only loosens the
    # tolerance; the semantics — incl. the cancelled bias — are identical)
    ref = _reference_f32(x, params, idx)
    assert jnp.allclose(out, ref, atol=1e-1, rtol=1e-1), \
        "mismatch vs f32 module reference"

    # also exercise the matmul-recompute path and the ragged-last-tile mask
    out2 = slimmable_block_forward(x, prepared, tile_n=96, keep_y=False)
    jax.block_until_ready(out2)
    assert out2.shape == (N, out_features_list[idx])
    assert jnp.allclose(out2, ref_k, atol=2e-3, rtol=2e-3), \
        "mismatch vs kernel-math reference (recompute path)"

    print("KERNEL_OK")
</pallas_src>

<mosaic_0001>
module attributes {stable_mosaic.version = 11 : i64} {
  func.func @_slimmable_block_kernel(%arg0: i32, %arg1: i32, %arg2: i32, %arg3: memref<128x32xbf16, #tpu.memory_space<vmem>>, %arg4: memref<32x128xbf16, #tpu.memory_space<vmem>>, %arg5: memref<1x128xf32, #tpu.memory_space<vmem>>, %arg6: memref<1x128xf32, #tpu.memory_space<vmem>>, %arg7: memref<128x128xf32, #tpu.memory_space<vmem>>, %arg8: memref<8x128xf32, #tpu.memory_space<vmem>>, %arg9: memref<8x128xf32, #tpu.memory_space<vmem>>, %arg10: memref<1x128xf32, #tpu.memory_space<vmem>>, %arg11: memref<1x128xf32, #tpu.memory_space<vmem>>, %arg12: memref<2x128x128xf32, #tpu.memory_space<vmem>>) attributes {dimension_semantics = [#tpu.dimension_semantics<parallel>, #tpu.dimension_semantics<arbitrary>, #tpu.dimension_semantics<arbitrary>], iteration_bounds = array<i64: 1, 2, 2>, scalar_prefetch = 0 : i64, scratch_operands = 5 : i64, tpu.core_type = #tpu.core_type<tc>, window_params = [{transform_indices = @transform_0, window_bounds = array<i64: 128, 32>}, {transform_indices = @transform_1, window_bounds = array<i64: 32, 128>}, {transform_indices = @transform_2, window_bounds = array<i64: 1, 128>}, {transform_indices = @transform_3, window_bounds = array<i64: 1, 128>}, {transform_indices = @transform_4, window_bounds = array<i64: 128, 128>}]} {
    %c0_i32 = arith.constant 0 : i32
    %0 = arith.cmpi eq, %arg1, %c0_i32 : i32
    %1 = arith.extui %0 : i1 to i32
    %c0_i32_0 = arith.constant 0 : i32
    %2 = arith.cmpi ne, %1, %c0_i32_0 : i32
    scf.if %2 {
      %c0 = arith.constant 0 : index
      %c0_5 = arith.constant 0 : index
      %11 = vector.load %arg3[%c0, %c0_5] : memref<128x32xbf16, #tpu.memory_space<vmem>>, vector<128x32xbf16>
      %c0_6 = arith.constant 0 : index
      %c0_7 = arith.constant 0 : index
      %12 = vector.load %arg4[%c0_6, %c0_7] : memref<32x128xbf16, #tpu.memory_space<vmem>>, vector<32x128xbf16>
      %cst = arith.constant dense<0.000000e+00> : vector<128x128xf32>
      %13 = tpu.matmul %11, %12, %cst {dimension_numbers = #tpu.dot_dimension_numbers<[1], [0], [0], [1], [0, 0, 1, 1], [], []>} : vector<128x32xbf16>, vector<32x128xbf16>, vector<128x128xf32> -> vector<128x128xf32>
      %14 = arith.index_cast %arg2 : i32 to index
      %c0_8 = arith.constant 0 : index
      %c0_9 = arith.constant 0 : index
      %15 = vector.load %arg12[%14, %c0_8, %c0_9] : memref<2x128x128xf32, #tpu.memory_space<vmem>>, vector<1x128x128xf32>
      %16 = vector.shape_cast %15 : vector<1x128x128xf32> to vector<128x128xf32>
      %17 = vector.shape_cast %13 : vector<128x128xf32> to vector<1x128x128xf32>
      tpu.vector_store %arg12[%14, %c0_8, %c0_9], %17 {strides = array<i32>} : memref<2x128x128xf32, #tpu.memory_space<vmem>>, vector<1x128x128xf32>,
      %c0_i32_10 = arith.constant 0 : i32
      %18 = arith.cmpi eq, %arg2, %c0_i32_10 : i32
      %19 = arith.extui %18 : i1 to i32
      %c0_i32_11 = arith.constant 0 : i32
      %20 = arith.cmpi ne, %19, %c0_i32_11 : i32
      scf.if %20 {
        %cst_20 = arith.constant 0.000000e+00 : f32
        %89 = vector.broadcast %cst_20 : f32 to vector<8x128xf32>
        %c0_21 = arith.constant 0 : index
        %c0_22 = arith.constant 0 : index
        %90 = vector.load %arg8[%c0_21, %c0_22] : memref<8x128xf32, #tpu.memory_space<vmem>>, vector<8x128xf32>
        tpu.vector_store %arg8[%c0_21, %c0_22], %89 {strides = array<i32>} : memref<8x128xf32, #tpu.memory_space<vmem>>, vector<8x128xf32>,
        %cst_23 = arith.constant 0.000000e+00 : f32
        %91 = vector.broadcast %cst_23 : f32 to vector<8x128xf32>
        %c0_24 = arith.constant 0 : index
        %c0_25 = arith.constant 0 : index
        %92 = vector.load %arg9[%c0_24, %c0_25] : memref<8x128xf32, #tpu.memory_space<vmem>>, vector<8x128xf32>
        tpu.vector_store %arg9[%c0_24, %c0_25], %91 {strides = array<i32>} : memref<8x128xf32, #tpu.memory_space<vmem>>, vector<8x128xf32>,
      } else {
      }
      %21 = vector.extract_strided_slice %13 {offsets = [0, 0], sizes = [8, 128], strides = [1, 1]} : vector<128x128xf32> to vector<8x128xf32>
      %22 = vector.extract_strided_slice %13 {offsets = [8, 0], sizes = [8, 128], strides = [1, 1]} : vector<128x128xf32> to vector<8x128xf32>
      %23 = vector.extract_strided_slice %13 {offsets = [16, 0], sizes = [8, 128], strides = [1, 1]} : vector<128x128xf32> to vector<8x128xf32>
      %24 = vector.extract_strided_slice %13 {offsets = [24, 0], sizes = [8, 128], strides = [1, 1]} : vector<128x128xf32> to vector<8x128xf32>
      %25 = vector.extract_strided_slice %13 {offsets = [32, 0], sizes = [8, 128], strides = [1, 1]} : vector<128x128xf32> to vector<8x128xf32>
      %26 = vector.extract_strided_slice %13 {offsets = [40, 0], sizes = [8, 128], strides = [1, 1]} : vector<128x128xf32> to vector<8x128xf32>
      %27 = vector.extract_strided_slice %13 {offsets = [48, 0], sizes = [8, 128], strides = [1, 1]} : vector<128x128xf32> to vector<8x128xf32>
      %28 = vector.extract_strided_slice %13 {offsets = [56, 0], sizes = [8, 128], strides = [1, 1]} : vector<128x128xf32> to vector<8x128xf32>
      %29 = vector.extract_strided_slice %13 {offsets = [64, 0], sizes = [8, 128], strides = [1, 1]} : vector<128x128xf32> to vector<8x128xf32>
      %30 = vector.extract_strided_slice %13 {offsets = [72, 0], sizes = [8, 128], strides = [1, 1]} : vector<128x128xf32> to vector<8x128xf32>
      %31 = vector.extract_strided_slice %13 {offsets = [80, 0], sizes = [8, 128], strides = [1, 1]} : vector<128x128xf32> to vector<8x128xf32>
      %32 = vector.extract_strided_slice %13 {offsets = [88, 0], sizes = [8, 128], strides = [1, 1]} : vector<128x128xf32> to vector<8x128xf32>
      %33 = vector.extract_strided_slice %13 {offsets = [96, 0], sizes = [8, 128], strides = [1, 1]} : vector<128x128xf32> to vector<8x128xf32>
      %34 = vector.extract_strided_slice %13 {offsets = [104, 0], sizes = [8, 128], strides = [1, 1]} : vector<128x128xf32> to vector<8x128xf32>
      %35 = vector.extract_strided_slice %13 {offsets = [112, 0], sizes = [8, 128], strides = [1, 1]} : vector<128x128xf32> to vector<8x128xf32>
      %36 = vector.extract_strided_slice %13 {offsets = [120, 0], sizes = [8, 128], strides = [1, 1]} : vector<128x128xf32> to vector<8x128xf32>
      %c0_12 = arith.constant 0 : index
      %c0_13 = arith.constant 0 : index
      %37 = vector.load %arg8[%c0_12, %c0_13] : memref<8x128xf32, #tpu.memory_space<vmem>>, vector<8x128xf32>
      %38 = arith.addf %21, %22 : vector<8x128xf32>
      %39 = arith.addf %23, %24 : vector<8x128xf32>
      %40 = arith.addf %25, %26 : vector<8x128xf32>
      %41 = arith.addf %27, %28 : vector<8x128xf32>
      %42 = arith.addf %29, %30 : vector<8x128xf32>
      %43 = arith.addf %31, %32 : vector<8x128xf32>
      %44 = arith.addf %33, %34 : vector<8x128xf32>
      %45 = arith.addf %35, %36 : vector<8x128xf32>
      %46 = arith.addf %38, %39 : vector<8x128xf32>
      %47 = arith.addf %40, %41 : vector<8x128xf32>
      %48 = arith.addf %42, %43 : vector<8x128xf32>
      %49 = arith.addf %44, %45 : vector<8x128xf32>
      %50 = arith.addf %46, %47 : vector<8x128xf32>
      %51 = arith.addf %48, %49 : vector<8x128xf32>
      %52 = arith.addf %50, %51 : vector<8x128xf32>
      %53 = arith.addf %37, %52 : vector<8x128xf32>
      %c0_14 = arith.constant 0 : index
      %c0_15 = arith.constant 0 : index
      %54 = vector.load %arg8[%c0_14, %c0_15] : memref<8x128xf32, #tpu.memory_space<vmem>>, vector<8x128xf32>
      tpu.vector_store %arg8[%c0_14, %c0_15], %53 {strides = array<i32>} : memref<8x128xf32, #tpu.memory_space<vmem>>, vector<8x128xf32>,
      %c0_16 = arith.constant 0 : index
      %c0_17 = arith.constant 0 : index
      %55 = vector.load %arg9[%c0_16, %c0_17] : memref<8x128xf32, #tpu.memory_space<vmem>>, vector<8x128xf32>
      %56 = arith.mulf %21, %21 : vector<8x128xf32>
      %57 = arith.mulf %22, %22 : vector<8x128xf32>
      %58 = arith.mulf %23, %23 : vector<8x128xf32>
      %59 = arith.mulf %24, %24 : vector<8x128xf32>
      %60 = arith.mulf %25, %25 : vector<8x128xf32>
      %61 = arith.mulf %26, %26 : vector<8x128xf32>
      %62 = arith.mulf %27, %27 : vector<8x128xf32>
      %63 = arith.mulf %28, %28 : vector<8x128xf32>
      %64 = arith.mulf %29, %29 : vector<8x128xf32>
      %65 = arith.mulf %30, %30 : vector<8x128xf32>
      %66 = arith.mulf %31, %31 : vector<8x128xf32>
      %67 = arith.mulf %32, %32 : vector<8x128xf32>
      %68 = arith.mulf %33, %33 : vector<8x128xf32>
      %69 = arith.mulf %34, %34 : vector<8x128xf32>
      %70 = arith.mulf %35, %35 : vector<8x128xf32>
      %71 = arith.mulf %36, %36 : vector<8x128xf32>
      %72 = arith.addf %56, %57 : vector<8x128xf32>
      %73 = arith.addf %58, %59 : vector<8x128xf32>
      %74 = arith.addf %60, %61 : vector<8x128xf32>
      %75 = arith.addf %62, %63 : vector<8x128xf32>
      %76 = arith.addf %64, %65 : vector<8x128xf32>
      %77 = arith.addf %66, %67 : vector<8x128xf32>
      %78 = arith.addf %68, %69 : vector<8x128xf32>
      %79 = arith.addf %70, %71 : vector<8x128xf32>
      %80 = arith.addf %72, %73 : vector<8x128xf32>
      %81 = arith.addf %74, %75 : vector<8x128xf32>
      %82 = arith.addf %76, %77 : vector<8x128xf32>
      %83 = arith.addf %78, %79 : vector<8x128xf32>
      %84 = arith.addf %80, %81 : vector<8x128xf32>
      %85 = arith.addf %82, %83 : vector<8x128xf32>
      %86 = arith.addf %84, %85 : vector<8x128xf32>
      %87 = arith.addf %55, %86 : vector<8x128xf32>
      %c0_18 = arith.constant 0 : index
      %c0_19 = arith.constant 0 : index
      %88 = vector.load %arg9[%c0_18, %c0_19] : memref<8x128xf32, #tpu.memory_space<vmem>>, vector<8x128xf32>
      tpu.vector_store %arg9[%c0_18, %c0_19], %87 {strides = array<i32>} : memref<8x128xf32, #tpu.memory_space<vmem>>, vector<8x128xf32>,
    } else {
    }
    %c1_i32 = arith.constant 1 : i32
    %3 = arith.cmpi eq, %arg1, %c1_i32 : i32
    %c0_i32_1 = arith.constant 0 : i32
    %4 = arith.cmpi eq, %arg2, %c0_i32_1 : i32
    %5 = arith.andi %3, %4 : i1
    %6 = arith.extui %5 : i1 to i32
    %c0_i32_2 = arith.constant 0 : i32
    %7 = arith.cmpi ne, %6, %c0_i32_2 : i32
    scf.if %7 {
      %c0 = arith.constant 0 : index
      %c0_5 = arith.constant 0 : index
      %11 = vector.load %arg8[%c0, %c0_5] : memref<8x128xf32, #tpu.memory_space<vmem>>, vector<8x128xf32>
      %cst = arith.constant dense<0.000000e+00> : vector<128xf32>
      %12 = vector.multi_reduction <add>, %11, %cst [0] : vector<8x128xf32> to vector<128xf32>
      %13 = vector.shape_cast %12 : vector<128xf32> to vector<1x128xf32>
      %c0_6 = arith.constant 0 : index
      %c0_7 = arith.constant 0 : index
      %14 = vector.load %arg9[%c0_6, %c0_7] : memref<8x128xf32, #tpu.memory_space<vmem>>, vector<8x128xf32>
      %cst_8 = arith.constant dense<0.000000e+00> : vector<128xf32>
      %15 = vector.multi_reduction <add>, %14, %cst_8 [0] : vector<8x128xf32> to vector<128xf32>
      %16 = vector.shape_cast %15 : vector<128xf32> to vector<1x128xf32>
      %cst_9 = arith.constant 3.906250e-03 : f32
      %17 = vector.broadcast %cst_9 : f32 to vector<1x128xf32>
      %18 = arith.mulf %13, %17 : vector<1x128xf32>
      %cst_10 = arith.constant 3.906250e-03 : f32
      %19 = vector.broadcast %cst_10 : f32 to vector<1x128xf32>
      %20 = arith.mulf %16, %19 : vector<1x128xf32>
      %21 = arith.mulf %18, %18 : vector<1x128xf32>
      %22 = arith.subf %20, %21 : vector<1x128xf32>
      %cst_11 = arith.constant 0.000000e+00 : f32
      %23 = vector.broadcast %cst_11 : f32 to vector<1x128xf32>
      %24 = arith.maximumf %22, %23 : vector<1x128xf32>
      %cst_12 = arith.constant 9.99999974E-6 : f32
      %25 = vector.broadcast %cst_12 : f32 to vector<1x128xf32>
      %26 = arith.addf %24, %25 : vector<1x128xf32>
      %27 = math.rsqrt %26 : vector<1x128xf32>
      %c0_13 = arith.constant 0 : index
      %c0_14 = arith.constant 0 : index
      %28 = vector.load %arg5[%c0_13, %c0_14] : memref<1x128xf32, #tpu.memory_space<vmem>>, vector<1x128xf32>
      %29 = arith.mulf %28, %27 : vector<1x128xf32>
      %c0_15 = arith.constant 0 : index
      %c0_16 = arith.constant 0 : index
      %30 = vector.load %arg10[%c0_15, %c0_16] : memref<1x128xf32, #tpu.memory_space<vmem>>, vector<1x128xf32>
      tpu.vector_store %arg10[%c0_15, %c0_16], %29 {strides = array<i32>} : memref<1x128xf32, #tpu.memory_space<vmem>>, vector<1x128xf32>,
      %c0_17 = arith.constant 0 : index
      %c0_18 = arith.constant 0 : index
      %31 = vector.load %arg6[%c0_17, %c0_18] : memref<1x128xf32, #tpu.memory_space<vmem>>, vector<1x128xf32>
      %32 = arith.mulf %18, %29 : vector<1x128xf32>
      %33 = arith.subf %31, %32 : vector<1x128xf32>
      %c0_19 = arith.constant 0 : index
      %c0_20 = arith.constant 0 : index
      %34 = vector.load %arg11[%c0_19, %c0_20] : memref<1x128xf32, #tpu.memory_space<vmem>>, vector<1x128xf32>
      tpu.vector_store %arg11[%c0_19, %c0_20], %33 {strides = array<i32>} : memref<1x128xf32, #tpu.memory_space<vmem>>, vector<1x128xf32>,
    } else {
    }
    %c1_i32_3 = arith.constant 1 : i32
    %8 = arith.cmpi eq, %arg1, %c1_i32_3 : i32
    %9 = arith.extui %8 : i1 to i32
    %c0_i32_4 = arith.constant 0 : i32
    %10 = arith.cmpi ne, %9, %c0_i32_4 : i32
    scf.if %10 {
      %11 = arith.index_cast %arg2 : i32 to index
      %c0 = arith.constant 0 : index
      %c0_5 = arith.constant 0 : index
      %12 = vector.load %arg12[%11, %c0, %c0_5] : memref<2x128x128xf32, #tpu.memory_space<vmem>>, vector<1x128x128xf32>
      %13 = vector.shape_cast %12 : vector<1x128x128xf32> to vector<128x128xf32>
      %c0_6 = arith.constant 0 : index
      %c0_7 = arith.constant 0 : index
      %14 = vector.load %arg10[%c0_6, %c0_7] : memref<1x128xf32, #tpu.memory_space<vmem>>, vector<1x128xf32>
      %15 = vector.broadcast %14 : vector<1x128xf32> to vector<128x128xf32>
      %16 = arith.mulf %13, %15 : vector<128x128xf32>
      %c0_8 = arith.constant 0 : index
      %c0_9 = arith.constant 0 : index
      %17 = vector.load %arg11[%c0_8, %c0_9] : memref<1x128xf32, #tpu.memory_space<vmem>>, vector<1x128xf32>
      %18 = vector.broadcast %17 : vector<1x128xf32> to vector<128x128xf32>
      %19 = arith.addf %16, %18 : vector<128x128xf32>
      %c0_10 = arith.constant 0 : index
      %c0_11 = arith.constant 0 : index
      %20 = vector.load %arg7[%c0_10, %c0_11] : memref<128x128xf32, #tpu.memory_space<vmem>>, vector<128x128xf32>
      tpu.vector_store %arg7[%c0_10, %c0_11], %19 {strides = array<i32>} : memref<128x128xf32, #tpu.memory_space<vmem>>, vector<128x128xf32>,
    } else {
    }
    return
  }
  func.func @transform_0(%arg0: i32, %arg1: i32, %arg2: i32) -> (i32, i32) {
    %c1_i32 = arith.constant 1 : i32
    %0 = arith.subi %c1_i32, %arg1 : i32
    %1 = arith.muli %arg2, %0 : i32
    %c0_i32 = arith.constant 0 : i32
    %c0_i32_0 = arith.constant 0 : i32
    return %1, %c0_i32 : i32, i32
  }
  func.func @transform_1(%arg0: i32, %arg1: i32, %arg2: i32) -> (i32, i32) {
    %c0_i32 = arith.constant 0 : i32
    %c0_i32_0 = arith.constant 0 : i32
    return %c0_i32, %arg0 : i32, i32
  }
  func.func @transform_2(%arg0: i32, %arg1: i32, %arg2: i32) -> (i32, i32) {
    %c0_i32 = arith.constant 0 : i32
    %c0_i32_0 = arith.constant 0 : i32
    return %c0_i32, %arg0 : i32, i32
  }
  func.func @transform_3(%arg0: i32, %arg1: i32, %arg2: i32) -> (i32, i32) {
    %c0_i32 = arith.constant 0 : i32
    %c0_i32_0 = arith.constant 0 : i32
    return %c0_i32, %arg0 : i32, i32
  }
  func.func @transform_4(%arg0: i32, %arg1: i32, %arg2: i32) -> (i32, i32) {
    %0 = arith.muli %arg2, %arg1 : i32
    %c0_i32 = arith.constant 0 : i32
    return %0, %arg0 : i32, i32
  }
}

</mosaic_0001>

<bundles_post_ra>
// kernel: slimmable_block_forward.1
= control target key start
LH: loop header
LB: loop body
LE: loop exit
PB: predicated region body
PF: predicated region fallthrough
CT: control target
= control target key end

     0   :  { %s960_s15 = smov 0   ;;  %s962_s16 = smov 0   ;;  %s1082_s0 = inlined_call_operand.vmem [shape: bf16[256,32], index: 0, kind: input, shape index: {}]   ;;  %s1083_s1 = inlined_call_operand.vmem [shape: bf16[32,128], index: 1, kind: input, shape index: {}]   ;;  %s1084_s2 = inlined_call_operand.vmem [shape: f32[1,128], index: 2, kind: input, shape index: {}]   ;;  %s1085_s3 = inlined_call_operand.vmem [shape: f32[1,128], index: 3, kind: input, shape index: {}]   ;;  %s1086_s4 = inlined_call_operand.vmem [shape: f32[256,128], index: 4, kind: output, shape index: {}]  }
   0x1   :  { %s964_s17 = smov 0   ;;  %s966_s18 = smov 0  }
   0x2   :  { %s968_s19 = smov 0  }
   0x3 LB: > { %s26_s20 = sadd.s32 1, %s924_s17  ;;  %s29_s21 = sadd.s32 1, %s928_s18  ;;  %s932_s19 = sphi %s968_s19, %s14_s19   ;;  %s928_s18 = sphi %s966_s18, %s1090_s18   ;;  %s924_s17 = sphi %s964_s17, %s1089_s17   ;;  %s920_s16 = sphi %s962_s16, %s1088_s16   ;;  %s916_s15 = sphi %s960_s15, %s1087_s15  }
   0x4   : > { %p27_p0 = scmp.ge.s32.totalorder %s26_s20, 2  ;;  %p773_p1 = scmp.ge.s32.totalorder %s932_s19, 1 }
   0x5   : > { %p219_p2 = scmp.lt.s32.totalorder %s932_s19, 5 }
   0x6   : > { %s1092_s20 = smov (%p27_p0, %s26_s20), 0  ;;  %s1094_s21 = smov (!%p27_p0, %s29_s21), %s928_s18 }
   0x7   : > { %p220_p3 = pnand %p773_p1, %p219_p2  ;;  %p31_p4 = scmp.ge.s32.totalorder %s1094_s21, 2 }
   0x8   : > { %s261_s22 = ssub.s32 (!%p220_p3), 1, %s920_s16  ;;  %s281_s23 = smul.u32 (!%p220_p3), %s916_s15, %s920_s16 }
   0x9   : > { %s1096_s21 = smov (%p31_p4, %s1094_s21), 0  ;;  %223 = sbr.rel (%p220_p3) target bundleno = 294 (0x126), region = 36 }
   0xa   : > { %s262_s24 = smul.u32 (!%p220_p3), %s916_s15, %s261_s22  ;;  %s776_s25 = sshll.u32 (!%p220_p3), %s281_s23, 4 }
   0xb   : > { %p283_p5 = scmp.lt.s32.totalorder (!%p220_p3), %s776_s25, 31  ;;  %p778_p7 = scmp.ne.s32.totalorder (!%p220_p3), %s920_s16, 0 }
   0xc   : > { %s774_s26 = sshll.u32 (!%p220_p3), %s262_s24, 4 }
   0xd   : > { %p264_p6 = scmp.lt.s32.totalorder (!%p220_p3), %s774_s26, 31 }
   0xe   : > { %s1098_s25 = smov (!%p283_p5, %s776_s25), 31  ;;  %296 = sbr.rel (%p778_p7) target bundleno = 209 (0xd1), region = 40 }
   0xf   : > { %s1100_s26 = smov (!%p264_p6, %s774_s26), 31  ;;  %s777_s27 = sshll.u32 %s1098_s25, 3 }
  0x10   : > { %s775_s28 = sshll.u32 %s1100_s26, 2  ;;  %s1001_s5 = scalar_lea.vmem %s1086_s4, %s777_s27 }
  0x11   : > { %s267_s8 = scalar_lea.vmem %s1082_s0, %s775_s28  ;;  %s827_s13 = sshll.u32 (!%p778_p7), %s916_s15, 7 }
  0x12   : > { %s444_s14 = scalar_lea.vmem (!%p778_p7), [#allocation6], %s827_s13  ;;  %p828_p8 = scmp.ne.s32.totalorder (!%p778_p7), %s916_s15, 0 }
  0x13   : > { %v842_v0 = vld [vmem:[%s1083_s1 + $0x8] sm:$0xff]  ;;  %v841_v1 = vld [vmem:[%s1083_s1] sm:$0xff]  ;;  %v835_v3 = vld [vmem:[%s267_s8 + $0x10] sm:$0xff]  ;;  %vm369_vm0 = vcmask 261120  }
  0x14   : > { %400 = vmatpush.bf16.msra.mxu0 %v842_v0  ;;  %843 = vmatpush.bf16.msra.mxu1 %v842_v0  ;;  %v833_v2 = vld [vmem:[%s267_s8] sm:$0xff]  ;;  %v839_v5 = vld [vmem:[%s267_s8 + $0x30] sm:$0xff]  ;;  %v834_v6 = vld [vmem:[%s267_s8 + $0x8] sm:$0xff] }
  0x15   : > { %844 = vmatpush.bf16.msra.mxu2 %v842_v0  ;;  %845 = vmatpush.bf16.msra.mxu3 %v842_v0  ;;  %v837_v4 = vld [vmem:[%s267_s8 + $0x20] sm:$0xff]  ;;  %v836_v7 = vld [vmem:[%s267_s8 + $0x18] sm:$0xff]  ;;  %v838_v8 = vld [vmem:[%s267_s8 + $0x28] sm:$0xff] }
  0x16   : > { %v840_v9 = vld [vmem:[%s267_s8 + $0x38] sm:$0xff] }
  0x18   : > { %401 = vmatpush.bf16.msra.mxu0 %v841_v1  ;;  %846 = vmatpush.bf16.msra.mxu1 %v841_v1 }
  0x19   : > { %847 = vmatpush.bf16.msra.mxu2 %v841_v1  ;;  %848 = vmatpush.bf16.msra.mxu3 %v841_v1 }
  0x1b   : > { %819 = vmatmul.msk.bf16.vlgmr.msra.gmra.mxu0 %vm369_vm0, %v833_v2  ;;  %821 = vmatmul.msk.bf16.vlgmr.msra.gmra.mxu1 %vm369_vm0, %v835_v3 }
  0x1c   : > { %823 = vmatmul.msk.bf16.vlgmr.msra.gmra.mxu2 %vm369_vm0, %v837_v4  ;;  %825 = vmatmul.msk.bf16.vlgmr.msra.gmra.mxu3 %vm369_vm0, %v839_v5 }
  0x2b   : > { %820 = vmatmul.msk.bf16.gmra.mxu0 %vm369_vm0, %v834_v6  ;;  %822 = vmatmul.msk.bf16.gmra.mxu1 %vm369_vm0, %v836_v7 }
  0x2c   : > { %824 = vmatmul.msk.bf16.gmra.mxu2 %vm369_vm0, %v838_v8  ;;  %826 = vmatmul.msk.bf16.gmra.mxu3 %vm369_vm0, %v840_v9 }
  0x98   : > { %v403_v10 = vpop.f32.mrf.mxu0  ;;  %v413_v11 = vpop.f32.mrf.mxu1 }
  0x99   : > { %445 = vst [vmem:[%s444_s14] sm:$0xff] %v403_v10 }
  0x9a   : > { %449 = vst [vmem:[%s444_s14 + $0x20] sm:$0xff] %v413_v11 }
  0x9f   : > { %v423_v12 = vpop.f32.mrf.mxu2  ;;  %v433_v13 = vpop.f32.mrf.mxu3 }
  0xa0   : > { %453 = vst [vmem:[%s444_s14 + $0x40] sm:$0xff] %v423_v12  ;;  %v405_v14 = vpop.f32.mrf.mxu0  ;;  %v415_v15 = vpop.f32.mrf.mxu1 }
  0xa1   : > { %457 = vst [vmem:[%s444_s14 + $0x60] sm:$0xff] %v433_v13 }
  0xa2   : > { %446 = vst [vmem:[%s444_s14 + $0x8] sm:$0xff] %v405_v14 }
  0xa3   : > { %450 = vst [vmem:[%s444_s14 + $0x28] sm:$0xff] %v415_v15 }
  0xa7   : > { %v425_v16 = vpop.f32.mrf.mxu2  ;;  %v435_v17 = vpop.f32.mrf.mxu3 }
  0xa8   : > { %454 = vst [vmem:[%s444_s14 + $0x48] sm:$0xff] %v425_v16  ;;  %v408_v18 = vpop.f32.mrf.mxu0  ;;  %v418_v19 = vpop.f32.mrf.mxu1 }
  0xa9   : > { %458 = vst [vmem:[%s444_s14 + $0x68] sm:$0xff] %v435_v17 }
  0xaa   : > { %447 = vst [vmem:[%s444_s14 + $0x10] sm:$0xff] %v408_v18 }
  0xab   : > { %451 = vst [vmem:[%s444_s14 + $0x30] sm:$0xff] %v418_v19 }
  0xaf   : > { %v428_v20 = vpop.f32.mrf.mxu2  ;;  %v438_v21 = vpop.f32.mrf.mxu3 }
  0xb0   : > { %455 = vst [vmem:[%s444_s14 + $0x50] sm:$0xff] %v428_v20  ;;  %v410_v22 = vpop.f32.mrf.mxu0  ;;  %v420_v23 = vpop.f32.mrf.mxu1 }
  0xb1   : > { %459 = vst [vmem:[%s444_s14 + $0x70] sm:$0xff] %v438_v21 }
  0xb2   : > { %448 = vst [vmem:[%s444_s14 + $0x18] sm:$0xff] %v410_v22 }
  0xb3   : > { %452 = vst [vmem:[%s444_s14 + $0x38] sm:$0xff] %v420_v23 }
  0xb5   : > { %464 = sbr.rel (%p828_p8) target bundleno = 189 (0xbd), region = 44 }
  0xb7   : > { %v430_v24 = vpop.f32.mrf.mxu2  ;;  %v440_v25 = vpop.f32.mrf.mxu3 }
  0xb8   : > { %456 = vst [vmem:[%s444_s14 + $0x58] sm:$0xff] %v430_v24 }
  0xb9   : > { %460 = vst [vmem:[%s444_s14 + $0x78] sm:$0xff] %v440_v25 }
  0xba   : > { %v934_v26 = vmov 0.0  }
  0xbb   : > { %465 = vst [vmem:[#allocation2] sm:$0xff] %v934_v26 }
  0xbc   : > { %466 = vst [vmem:[#allocation3] sm:$0xff] %v934_v26 }
  0xbd PF: > { %v468_v27 = vadd.f32 %v405_v14, %v403_v10  ;;  %v469_v28 = vadd.f32 %v410_v22, %v408_v18  ;;  %v470_v29 = vadd.f32 %v415_v15, %v413_v11  ;;  %v471_v30 = vadd.f32 %v420_v23, %v418_v19 }
  0xbe   : > { %v472_v31 = vadd.f32 %v425_v16, %v423_v12  ;;  %v473_v32 = vadd.f32 %v430_v24, %v428_v20  ;;  %v474_v33 = vadd.f32 %v435_v17, %v433_v13  ;;  %v475_v34 = vadd.f32 %v440_v25, %v438_v21 }
  0xbf   : > { %v476_v35 = vadd.f32 %v469_v28, %v468_v27  ;;  %v477_v36 = vadd.f32 %v471_v30, %v470_v29  ;;  %v486_v37 = vmul.f32 %v403_v10, %v403_v10  ;;  %v487_v38 = vmul.f32 %v405_v14, %v405_v14 }
  0xc0   : > { %v478_v39 = vadd.f32 %v473_v32, %v472_v31  ;;  %v479_v40 = vadd.f32 %v475_v34, %v474_v33  ;;  %v488_v41 = vmul.f32 %v408_v18, %v408_v18  ;;  %v489_v42 = vmul.f32 %v410_v22, %v410_v22 }
  0xc1   : > { %v480_v43 = vadd.f32 %v477_v36, %v476_v35  ;;  %v490_v44 = vmul.f32 %v413_v11, %v413_v11  ;;  %v491_v45 = vmul.f32 %v415_v15, %v415_v15  ;;  %v492_v46 = vmul.f32 %v418_v19, %v418_v19 }
  0xc2   : > { %v481_v47 = vadd.f32 %v479_v40, %v478_v39  ;;  %v493_v48 = vmul.f32 %v420_v23, %v420_v23  ;;  %v494_v49 = vmul.f32 %v423_v12, %v423_v12  ;;  %v495_v50 = vmul.f32 %v425_v16, %v425_v16  ;;  %v467_v51 = vld [vmem:[#allocation2] sm:$0xff] }
  0xc3   : > { %v496_v52 = vmul.f32 %v428_v20, %v428_v20  ;;  %v497_v53 = vmul.f32 %v430_v24, %v430_v24  ;;  %v498_v54 = vmul.f32 %v433_v13, %v433_v13  ;;  %v499_v55 = vmul.f32 %v435_v17, %v435_v17  ;;  %v485_v10 = vld [vmem:[#allocation3] sm:$0xff] }
  0xc4   : > { %v482_v56 = vadd.f32 %v481_v47, %v480_v43  ;;  %v500_v57 = vmul.f32 %v438_v21, %v438_v21  ;;  %v501_v58 = vmul.f32 %v440_v25, %v440_v25  ;;  %v502_v59 = vadd.f32 %v487_v38, %v486_v37 }
  0xc5   : > { %v503_v60 = vadd.f32 %v489_v42, %v488_v41  ;;  %v504_v61 = vadd.f32 %v491_v45, %v490_v44  ;;  %v505_v62 = vadd.f32 %v493_v48, %v492_v46  ;;  %v506_v63 = vadd.f32 %v495_v50, %v494_v49 }
  0xc6   : > { %v483_v0 = vadd.f32 %v482_v56, %v467_v51  ;;  %v507_v1 = vadd.f32 %v497_v53, %v496_v52  ;;  %v508_v2 = vadd.f32 %v499_v55, %v498_v54  ;;  %v509_v3 = vadd.f32 %v501_v58, %v500_v57 }
  0xc7   : > { %v510_v4 = vadd.f32 %v503_v60, %v502_v59  ;;  %v511_v5 = vadd.f32 %v505_v62, %v504_v61 }
  0xc8   : > { %484 = vst [vmem:[#allocation2] sm:$0xff] %v483_v0  ;;  %v512_v6 = vadd.f32 %v507_v1, %v506_v63  ;;  %v513_v7 = vadd.f32 %v509_v3, %v508_v2 }
  0xc9   : > { %v514_v8 = vadd.f32 %v511_v5, %v510_v4 }
  0xca   : > { %v515_v9 = vadd.f32 %v513_v7, %v512_v6 }
  0xcc   : > { %v516_v11 = vadd.f32 %v515_v9, %v514_v8 }
  0xce   : > { %v517_v12 = vadd.f32 %v516_v11, %v485_v10 }
  0xd0   : > { %518 = vst [vmem:[#allocation3] sm:$0xff] %v517_v12 }
  0xd1 PF: > { %p519_p9 = scmp.eq.s32.totalorder %s920_s16, 1  ;;  %p520_p10 = scmp.eq.s32.totalorder %s916_s15, 0 }
  0xd3   : > { %p521_p11 = pnand %p520_p10, %p519_p9 }
  0xd5   : > { %524 = sbr.rel (%p521_p11) target bundleno = 266 (0x10a), region = 48 }
  0xda   : > { %v525_v13 = vld [vmem:[#allocation2] sm:$0xff]  ;;  %v532_v14 = vld [vmem:[#allocation3] sm:$0xff] }
  0xdb   : > { %v526_v15 = vrot.slane %v525_v13, 4  ;;  %v533_v16 = vrot.slane %v532_v14, 4  ;;  %v555_v39 = vld [vmem:[%s1084_s2] sm:$0x1] }
  0xdc   : > { %v558_v42 = vld [vmem:[%s1085_s3] sm:$0x1] }
  0xdd   : > { %v527_v17 = vadd.f32 %v526_v15, %v525_v13  ;;  %v534_v18 = vadd.f32 %v533_v16, %v532_v14 }
  0xdf   : > { %v528_v19 = vrot.slane %v527_v17, 2  ;;  %v535_v20 = vrot.slane %v534_v18, 2 }
  0xe1   : > { %v529_v21 = vadd.f32 %v528_v19, %v527_v17  ;;  %v536_v22 = vadd.f32 %v535_v20, %v534_v18 }
  0xe3   : > { %v530_v23 = vrot.slane %v529_v21, 1  ;;  %v537_v24 = vrot.slane %v536_v22, 1 }
  0xe5   : > { %v531_v25 = vadd.f32 %v530_v23, %v529_v21  ;;  %v538_v26 = vadd.f32 %v537_v24, %v536_v22 }
  0xe7   : > { %v539_v27 = vmul.f32 0.00390625, %v531_v25  ;;  %v540_v28 = vmul.f32 0.00390625, %v538_v26 }
  0xe9   : > { %v541_v29 = vmul.f32 %v539_v27, %v539_v27 }
  0xeb   : > { %v542_v30 = vsub.f32 %v540_v28, %v541_v29 }
  0xed   : > { %v543_v31 = vmax.f32 %v542_v30, 0.0 }
  0xef   : > { %v544_v32 = vadd.f32 1e-05, %v543_v31 }
  0xf1   : > { %890 = vrsqrt.f32 %v544_v32  ;;  %vm551_vm1 = vweird.f32 %v544_v32 }
  0xf7   : > { %v891_v33 = vpop.eup %890 }
  0xf8   : > { %v546_v34 = vmul.f32 %v891_v33, %v544_v32  ;;  %vm552_vm2 = vweird.f32 %v891_v33 }
  0xf9   : > { %vm553_vm3 = vmor %vm551_vm1, %vm552_vm2 }
  0xfa   : > { %v547_v35 = vmul.f32 %v891_v33, %v546_v34 }
  0xfc   : > { %v548_v36 = vmul.f32 0.5, %v547_v35 }
  0xfe   : > { %v549_v37 = vsub.f32 1.5, %v548_v36 }
 0x100   : > { %v550_v38 = vmul.f32 %v891_v33, %v549_v37 }
 0x102   : > { %v554_v40 = vsel %vm553_vm3, %v891_v33, %v550_v38 }
 0x103   : > { %v556_v41 = vmul.f32 %v555_v39, %v554_v40 }
 0x105   : > { %557 = vst [vmem:[#allocation4] sm:$0x1] %v556_v41  ;;  %v559_v43 = vmul.f32 %v556_v41, %v539_v27 }
 0x107   : > { %v560_v44 = vsub.f32 %v558_v42, %v559_v43 }
 0x109   : > { %561 = vst [vmem:[#allocation5] sm:$0x1] %v560_v44 }
 0x10a PF: > { %p829_p12 = scmp.ne.s32.totalorder %s920_s16, 1 }
 0x10b   : > { %s830_s26 = sshll.u32 (!%p829_p12), %s916_s15, 7 }
 0x10c   : > { %564 = sbr.rel (%p829_p12) target bundleno = 294 (0x126), region = 52  ;;  %s1033_s27 = scalar_lea.vmem (!%p829_p12), [#allocation6], %s830_s26 }
 0x111   : > { %v892_v45 = vld [vmem:[#allocation4] ss:$0 sm:$0xff]  ;;  %v893_v46 = vld [vmem:[#allocation5] ss:$0 sm:$0xff]  ;;  %v567_v47 = vld [vmem:[%s1033_s27] sm:$0xff] }
 0x112   : > { %v568_v48 = vld [vmem:[%s1033_s27 + $0x8] sm:$0xff]  ;;  %v569_v49 = vld [vmem:[%s1033_s27 + $0x10] sm:$0xff]  ;;  %v587_v50 = vmul.f32 %v892_v45, %v567_v47  ;;  %v570_v53 = vld [vmem:[%s1033_s27 + $0x18] sm:$0xff] }
 0x113   : > { %v588_v51 = vmul.f32 %v892_v45, %v568_v48  ;;  %v589_v52 = vmul.f32 %v892_v45, %v569_v49  ;;  %v571_v54 = vld [vmem:[%s1033_s27 + $0x20] sm:$0xff]  ;;  %v572_v55 = vld [vmem:[%s1033_s27 + $0x28] sm:$0xff]  ;;  %v590_v56 = vmul.f32 %v892_v45, %v570_v53  ;;  %v573_v59 = vld [vmem:[%s1033_s27 + $0x30] sm:$0xff] }
 0x114   : > { %v591_v57 = vmul.f32 %v892_v45, %v571_v54  ;;  %v592_v58 = vmul.f32 %v892_v45, %v572_v55  ;;  %v574_v60 = vld [vmem:[%s1033_s27 + $0x38] sm:$0xff]  ;;  %v575_v61 = vld [vmem:[%s1033_s27 + $0x40] sm:$0xff]  ;;  %v607_v62 = vadd.f32 %v893_v46, %v587_v50  ;;  %v593_v1 = vmul.f32 %v892_v45, %v573_v59  ;;  %v576_v2 = vld [vmem:[%s1033_s27 + $0x48] sm:$0xff] }
 0x115   : > { %v608_v63 = vadd.f32 %v893_v46, %v588_v51  ;;  %v609_v0 = vadd.f32 %v893_v46, %v589_v52  ;;  %v610_v3 = vadd.f32 %v893_v46, %v590_v56  ;;  %v594_v4 = vmul.f32 %v892_v45, %v574_v60  ;;  %v577_v5 = vld [vmem:[%s1033_s27 + $0x50] sm:$0xff]  ;;  %v578_v8 = vld [vmem:[%s1033_s27 + $0x58] sm:$0xff]  ;;  %v579_v11 = vld [vmem:[%s1033_s27 + $0x60] sm:$0xff] }
 0x116   : > { %623 = vst [vmem:[%s1001_s5] sm:$0xff] %v607_v62  ;;  %v611_v6 = vadd.f32 %v893_v46, %v591_v57  ;;  %v595_v7 = vmul.f32 %v892_v45, %v575_v61  ;;  %v612_v9 = vadd.f32 %v893_v46, %v592_v58  ;;  %v596_v10 = vmul.f32 %v892_v45, %v576_v2  ;;  %v580_v14 = vld [vmem:[%s1033_s27 + $0x68] sm:$0xff]  ;;  %v581_v17 = vld [vmem:[%s1033_s27 + $0x70] sm:$0xff]  ;;  %v582_v20 = vld [vmem:[%s1033_s27 + $0x78] sm:$0xff] }
 0x117   : > { %624 = vst [vmem:[%s1001_s5 + $0x8] sm:$0xff] %v608_v63  ;;  %v613_v12 = vadd.f32 %v893_v46, %v593_v1  ;;  %v597_v13 = vmul.f32 %v892_v45, %v577_v5  ;;  %v614_v15 = vadd.f32 %v893_v46, %v594_v4  ;;  %v598_v16 = vmul.f32 %v892_v45, %v578_v8 }
 0x118   : > { %625 = vst [vmem:[%s1001_s5 + $0x10] sm:$0xff] %v609_v0  ;;  %v615_v18 = vadd.f32 %v893_v46, %v595_v7  ;;  %v599_v19 = vmul.f32 %v892_v45, %v579_v11  ;;  %v616_v21 = vadd.f32 %v893_v46, %v596_v10  ;;  %v600_v22 = vmul.f32 %v892_v45, %v580_v14 }
 0x119   : > { %626 = vst [vmem:[%s1001_s5 + $0x18] sm:$0xff] %v610_v3  ;;  %v617_v23 = vadd.f32 %v893_v46, %v597_v13  ;;  %v601_v24 = vmul.f32 %v892_v45, %v581_v17  ;;  %v618_v25 = vadd.f32 %v893_v46, %v598_v16  ;;  %v602_v26 = vmul.f32 %v892_v45, %v582_v20 }
 0x11a   : > { %627 = vst [vmem:[%s1001_s5 + $0x20] sm:$0xff] %v611_v6  ;;  %v619_v27 = vadd.f32 %v893_v46, %v599_v19  ;;  %v620_v28 = vadd.f32 %v893_v46, %v600_v22 }
 0x11b   : > { %628 = vst [vmem:[%s1001_s5 + $0x28] sm:$0xff] %v612_v9  ;;  %v621_v29 = vadd.f32 %v893_v46, %v601_v24  ;;  %v622_v30 = vadd.f32 %v893_v46, %v602_v26 }
 0x11c   : > { %629 = vst [vmem:[%s1001_s5 + $0x30] sm:$0xff] %v613_v12 }
 0x11d   : > { %630 = vst [vmem:[%s1001_s5 + $0x38] sm:$0xff] %v614_v15 }
 0x11e   : > { %631 = vst [vmem:[%s1001_s5 + $0x40] sm:$0xff] %v615_v18 }
 0x11f   : > { %632 = vst [vmem:[%s1001_s5 + $0x48] sm:$0xff] %v616_v21 }
 0x120   : > { %633 = vst [vmem:[%s1001_s5 + $0x50] sm:$0xff] %v617_v23 }
 0x121   : > { %634 = vst [vmem:[%s1001_s5 + $0x58] sm:$0xff] %v618_v25 }
 0x122   : > { %635 = vst [vmem:[%s1001_s5 + $0x60] sm:$0xff] %v619_v27 }
 0x123   : > { %636 = vst [vmem:[%s1001_s5 + $0x68] sm:$0xff] %v620_v28 }
 0x124   : > { %637 = vst [vmem:[%s1001_s5 + $0x70] sm:$0xff] %v621_v29 }
 0x125   : > { %638 = vst [vmem:[%s1001_s5 + $0x78] sm:$0xff] %v622_v30 }
 0x126 PF: > { %s14_s19 = sadd.s32 1, %s932_s19   ;;  %s1087_s15 = smov %s924_s17 }
 0x127   : > { %p11_p13 = scmp.ge.s32.totalorder %s14_s19, 6   ;;  %s1088_s16 = smov %s928_s18 }
 0x128   : > { %s1089_s17 = smov %s1092_s20  ;;  %s1090_s18 = smov %s1096_s21 }
 0x129   :  { %13 = sbr.rel (!%p11_p13) target bundleno = 3 (0x3), region = 93 }

</bundles_post_ra>
